<compile_context>
chip_gen: v6e
topology: v6e:2x2x1
jax: 0.10.0
libtpu: 0.0.40
codegen_flags: <defaults>
</compile_context>

<pallas_src>
import functools

import jax
import jax.numpy as jnp
from jax.experimental import pallas as pl
from jax.experimental.pallas import tpu as pltpu


def _cnn_attention_kernel(x_ref, w1_ref, b1_ref, w2_ref, b2_ref, o_ref):
    # x_ref : (C, tm)    pixel tile, pixels on the lane axis (batch dim squeezed)
    # w1_ref: (HID, C)   hidden 1x1 conv weight (PyTorch (out, in) layout), resident
    # b1_ref: (HID, 1)   hidden bias (f32), broadcast across lanes
    # w2_ref: (HID, 1)   final 1x1 conv weight as a column (f32)
    # b2_ref: (1, 1)     final bias scalar, SMEM
    # o_ref : (1, tm)    lane-dense attention row
    x = x_ref[...]

    # (HID, C) @ (C, tm) -> (HID, tm); f32 accumulation on the MXU.
    pre = jnp.dot(w1_ref[...], x, preferred_element_type=jnp.float32) + b1_ref[...]
    h = jnp.tanh(pre)                                    # f32 activations (EUP)

    # Width-1 projection: VPU broadcast-multiply + sublane reduce (XLU),
    # instead of a degenerate N=1 MXU matmul.
    att = jnp.sum(h * w2_ref[...], axis=0, keepdims=True) + b2_ref[0, 0]

    o_ref[...] = jax.nn.sigmoid(att).astype(o_ref.dtype)


@functools.partial(jax.jit, static_argnames=("tm",))
def cnn_attention(x_nchw, w1, b1, w2, b2, *, tm=32768):
    """CnnAttention forward.

    x_nchw : (B, C, H, W)
    w1     : (HID, C)   conv1 weight (PyTorch (out, in, 1, 1) squeezed)
    b1     : (HID,)     conv1 bias
    w2     : (HID,)     conv2 weight (n_att = 1)
    b2     : ()         conv2 bias
    returns (B, 1, H, W) float32 = sigmoid(conv2(tanh(conv1(x))))
    """
    B, C, H, W = x_nchw.shape
    hid = w1.shape[0]
    HW = H * W
    N = B * HW

    # Free view: NCHW is channel-major per image -> (B, C, HW). No HBM pass.
    x_bcn = x_nchw.reshape(B, C, HW)
    x_itemsize = jnp.dtype(x_bcn.dtype).itemsize

    # MXU operands share x's dtype; everything after the matmul is f32.
    w1_m = w1.astype(x_bcn.dtype)
    b1_m = b1.reshape(hid, 1).astype(jnp.float32)
    w2_m = w2.reshape(hid, 1).astype(jnp.float32)
    b2_m = jnp.asarray(b2, jnp.float32).reshape(1, 1)

    # Pixel-tile size: multiple of 128 lanes, capped so
    #   2 * (C * tm) x double-buffer  +  ~2 * (HID * tm) f32 temps  +  out row
    # stays comfortably under the 32 MiB scoped-VMEM default (v7x-safe).
    bytes_per_px = 2 * C * x_itemsize + (2 * hid + 4) * 4
    vmem_budget = 20 * 1024 * 1024
    tm_cap = max(128, (vmem_budget // bytes_per_px) // 128 * 128)
    tm_req = max(128, (tm // 128) * 128)
    tm_eff = min(tm_req, tm_cap, pl.cdiv(HW, 128) * 128)

    grid = (B, pl.cdiv(HW, tm_eff))

    cost = pl.CostEstimate(
        flops=int(2 * hid * C * N + 4 * hid * N + 2 * N),
        transcendentals=int(hid * N + N),
        bytes_accessed=int(C * N * x_itemsize + N * 4
                           + hid * C * x_itemsize + 2 * hid * 4 + 4),
    )

    out = pl.pallas_call(
        _cnn_attention_kernel,
        out_shape=jax.ShapeDtypeStruct((B, 1, HW), jnp.float32),
        grid_spec=pltpu.PrefetchScalarGridSpec(
            num_scalar_prefetch=0,
            grid=grid,
            in_specs=[
                # x tile: batch squeezed, pixels on lanes.  Ragged HW tail is
                # handled by Pallas masking (channel reduce never crosses pixels).
                pl.BlockSpec((pl.Squeezed(), C, tm_eff), lambda b, i: (b, 0, i)),
                pl.BlockSpec((hid, C), lambda b, i: (0, 0)),        # w1 (resident)
                pl.BlockSpec((hid, 1), lambda b, i: (0, 0)),        # b1 (resident)
                pl.BlockSpec((hid, 1), lambda b, i: (0, 0)),        # w2 (resident)
                pl.BlockSpec(memory_space=pltpu.MemorySpace.SMEM),  # b2 scalar
            ],
            out_specs=pl.BlockSpec((pl.Squeezed(), 1, tm_eff),
                                   lambda b, i: (b, 0, i)),          # lane-dense row
        ),
        compiler_params=pltpu.CompilerParams(
            dimension_semantics=("parallel", "parallel")),
        cost_estimate=cost,
    )(x_bcn, w1_m, b1_m, w2_m, b2_m)

    # (B, 1, HW) -> (B, 1, H, W): free reshape, no data movement.
    return out.reshape(B, 1, H, W)


def _reference(x_nchw, w1, b1, w2, b2):
    """Pure-JAX reference of the PyTorch forward (f32 throughout)."""
    B, C, H, W = x_nchw.shape
    xf = jnp.transpose(x_nchw, (0, 2, 3, 1)).reshape(-1, C)          # (N, C)
    h = jnp.tanh(xf @ w1.T + b1[None, :])                            # (N, HID)
    att = jax.nn.sigmoid(h @ w2.reshape(-1, 1) + jnp.reshape(b2, (1, 1)))
    return jnp.transpose(att.reshape(B, H, W, 1), (0, 3, 1, 2))      # (B,1,H,W)


if __name__ == "__main__":
    # Small shapes consistent with the module: embed_dim=32, hid_att_dim=32.
    B, C, H, W = 2, 32, 16, 16
    HID = 32

    key = jax.random.PRNGKey(0)
    k_x, k_w1, k_b1, k_w2, k_b2, k_x2 = jax.random.split(key, 6)

    x = jax.random.normal(k_x, (B, C, H, W), dtype=jnp.float32)

    # Deterministic synthetic init matching PyTorch conv defaults (uniform +-1/sqrt(fan_in)).
    s1 = 1.0 / jnp.sqrt(jnp.float32(C))
    w1 = jax.random.uniform(k_w1, (HID, C), jnp.float32, -s1, s1)   # conv1 weight (out,in)
    b1 = jax.random.uniform(k_b1, (HID,), jnp.float32, -s1, s1)
    s2 = 1.0 / jnp.sqrt(jnp.float32(HID))
    w2 = jax.random.uniform(k_w2, (HID,), jnp.float32, -s2, s2)     # conv2 weight (n_att=1)
    b2 = jax.random.uniform(k_b2, (), jnp.float32, -s2, s2)

    # --- default tile (auto-capped to HW): single pixel tile per image ---
    out = jax.block_until_ready(cnn_attention(x, w1, b1, w2, b2))
    ref = jax.block_until_ready(_reference(x, w1, b1, w2, b2))
    assert out.shape == (B, 1, H, W), out.shape
    assert jnp.allclose(out, ref, atol=1e-5, rtol=1e-5), float(
        jnp.max(jnp.abs(out - ref)))

    # --- multi-step grid along pixels: HW=256, tm=128 -> grid (2, 2) ---
    out_ms = jax.block_until_ready(cnn_attention(x, w1, b1, w2, b2, tm=128))
    assert out_ms.shape == (B, 1, H, W), out_ms.shape
    assert jnp.allclose(out_ms, ref, atol=1e-5, rtol=1e-5), float(
        jnp.max(jnp.abs(out_ms - ref)))

    # --- ragged pixel tail: 12x12 spatial -> HW=144, masked tail block ---
    x_odd = jax.random.normal(k_x2, (B, C, 12, 12), dtype=jnp.float32)
    out_odd = jax.block_until_ready(cnn_attention(x_odd, w1, b1, w2, b2))
    ref_odd = jax.block_until_ready(_reference(x_odd, w1, b1, w2, b2))
    assert out_odd.shape == (B, 1, 12, 12), out_odd.shape
    assert jnp.allclose(out_odd, ref_odd, atol=1e-5, rtol=1e-5), float(
        jnp.max(jnp.abs(out_odd - ref_odd)))

    print("KERNEL_OK")
</pallas_src>

<mosaic_0001>
module attributes {stable_mosaic.version = 11 : i64} {
  func.func @_cnn_attention_kernel(%arg0: i32, %arg1: i32, %arg2: memref<1x32x256xf32, #tpu.memory_space<vmem>>, %arg3: memref<32x32xf32, #tpu.memory_space<vmem>>, %arg4: memref<32x1xf32, #tpu.memory_space<vmem>>, %arg5: memref<32x1xf32, #tpu.memory_space<vmem>>, %arg6: memref<1x1xf32, #tpu.memory_space<smem>>, %arg7: memref<1x1x256xf32, #tpu.memory_space<vmem>>) attributes {dimension_semantics = [#tpu.dimension_semantics<parallel>, #tpu.dimension_semantics<parallel>], iteration_bounds = array<i64: 2, 1>, scalar_prefetch = 0 : i64, scratch_operands = 0 : i64, tpu.core_type = #tpu.core_type<tc>, window_params = [{transform_indices = @transform_0, window_bounds = array<i64: 1, 32, 256>}, {pipeline_mode = #tpu.pipeline_mode<synchronous>, transform_indices = @transform_1, window_bounds = array<i64: 32, 32>}, {pipeline_mode = #tpu.pipeline_mode<synchronous>, transform_indices = @transform_2, window_bounds = array<i64: 32, 1>}, {pipeline_mode = #tpu.pipeline_mode<synchronous>, transform_indices = @transform_3, window_bounds = array<i64: 32, 1>}, {transform_indices = @transform_4, window_bounds = array<i64: 1, 1>}, {transform_indices = @transform_5, window_bounds = array<i64: 1, 1, 256>}]} {
    %c0 = arith.constant 0 : index
    %c0_0 = arith.constant 0 : index
    %c0_1 = arith.constant 0 : index
    %0 = vector.load %arg2[%c0, %c0_0, %c0_1] : memref<1x32x256xf32, #tpu.memory_space<vmem>>, vector<1x32x256xf32>
    %1 = vector.shape_cast %0 : vector<1x32x256xf32> to vector<32x256xf32>
    %c0_2 = arith.constant 0 : index
    %c0_3 = arith.constant 0 : index
    %2 = vector.load %arg3[%c0_2, %c0_3] : memref<32x32xf32, #tpu.memory_space<vmem>>, vector<32x32xf32>
    %cst = arith.constant dense<0.000000e+00> : vector<32x256xf32>
    %3 = tpu.matmul %2, %1, %cst {dimension_numbers = #tpu.dot_dimension_numbers<[1], [0], [0], [1], [0, 0, 1, 1], [], []>} : vector<32x32xf32>, vector<32x256xf32>, vector<32x256xf32> -> vector<32x256xf32>
    %c0_4 = arith.constant 0 : index
    %c0_5 = arith.constant 0 : index
    %4 = vector.load %arg4[%c0_4, %c0_5] : memref<32x1xf32, #tpu.memory_space<vmem>>, vector<32x1xf32>
    %5 = vector.broadcast %4 : vector<32x1xf32> to vector<32x256xf32>
    %6 = arith.addf %3, %5 : vector<32x256xf32>
    %7 = math.tanh %6 : vector<32x256xf32>
    %c0_6 = arith.constant 0 : index
    %c0_7 = arith.constant 0 : index
    %8 = vector.load %arg5[%c0_6, %c0_7] : memref<32x1xf32, #tpu.memory_space<vmem>>, vector<32x1xf32>
    %9 = vector.broadcast %8 : vector<32x1xf32> to vector<32x256xf32>
    %10 = arith.mulf %7, %9 : vector<32x256xf32>
    %cst_8 = arith.constant dense<0.000000e+00> : vector<256xf32>
    %11 = vector.multi_reduction <add>, %10, %cst_8 [0] : vector<32x256xf32> to vector<256xf32>
    %12 = vector.shape_cast %11 : vector<256xf32> to vector<1x256xf32>
    %c0_9 = arith.constant 0 : index
    %c0_10 = arith.constant 0 : index
    %13 = memref.load %arg6[%c0_9, %c0_10] : memref<1x1xf32, #tpu.memory_space<smem>>
    %14 = vector.broadcast %13 : f32 to vector<1x256xf32>
    %15 = arith.addf %12, %14 : vector<1x256xf32>
    %16 = arith.negf %15 : vector<1x256xf32>
    %17 = math.exp %16 : vector<1x256xf32>
    %cst_11 = arith.constant 1.000000e+00 : f32
    %18 = vector.broadcast %cst_11 : f32 to vector<1x256xf32>
    %19 = arith.addf %18, %17 : vector<1x256xf32>
    %20 = arith.divf %18, %19 : vector<1x256xf32>
    %c0_12 = arith.constant 0 : index
    %c0_13 = arith.constant 0 : index
    %c0_14 = arith.constant 0 : index
    %21 = vector.load %arg7[%c0_12, %c0_13, %c0_14] : memref<1x1x256xf32, #tpu.memory_space<vmem>>, vector<1x1x256xf32>
    %22 = vector.shape_cast %21 : vector<1x1x256xf32> to vector<1x256xf32>
    %23 = vector.shape_cast %20 : vector<1x256xf32> to vector<1x1x256xf32>
    tpu.vector_store %arg7[%c0_12, %c0_13, %c0_14], %23 {strides = array<i32>} : memref<1x1x256xf32, #tpu.memory_space<vmem>>, vector<1x1x256xf32>,
    return
  }
  func.func @transform_0(%arg0: i32, %arg1: i32) -> (i32, i32, i32) {
    %c0_i32 = arith.constant 0 : i32
    %c0_i32_0 = arith.constant 0 : i32
    return %arg0, %c0_i32, %arg1 : i32, i32, i32
  }
  func.func @transform_1(%arg0: i32, %arg1: i32) -> (i32, i32) {
    %c0_i32 = arith.constant 0 : i32
    %c0_i32_0 = arith.constant 0 : i32
    %c0_i32_1 = arith.constant 0 : i32
    return %c0_i32, %c0_i32_0 : i32, i32
  }
  func.func @transform_2(%arg0: i32, %arg1: i32) -> (i32, i32) {
    %c0_i32 = arith.constant 0 : i32
    %c0_i32_0 = arith.constant 0 : i32
    %c0_i32_1 = arith.constant 0 : i32
    return %c0_i32, %c0_i32_0 : i32, i32
  }
  func.func @transform_3(%arg0: i32, %arg1: i32) -> (i32, i32) {
    %c0_i32 = arith.constant 0 : i32
    %c0_i32_0 = arith.constant 0 : i32
    %c0_i32_1 = arith.constant 0 : i32
    return %c0_i32, %c0_i32_0 : i32, i32
  }
  func.func @transform_4(%arg0: i32, %arg1: i32) -> (i32, i32) {
    %c0_i32 = arith.constant 0 : i32
    %c0_i32_0 = arith.constant 0 : i32
    %c0_i32_1 = arith.constant 0 : i32
    return %c0_i32, %c0_i32_0 : i32, i32
  }
  func.func @transform_5(%arg0: i32, %arg1: i32) -> (i32, i32, i32) {
    %c0_i32 = arith.constant 0 : i32
    %c0_i32_0 = arith.constant 0 : i32
    return %arg0, %c0_i32, %arg1 : i32, i32, i32
  }
}

</mosaic_0001>

<bundles_post_ra>
// kernel: cnn_attention.1
= control target key start
LH: loop header
LB: loop body
LE: loop exit
PB: predicated region body
PF: predicated region fallthrough
CT: control target
= control target key end

     0   :  { %s717_s20 = smov 0   ;;  %s719_s21 = smov 0   ;;  %s794_s0 = inlined_call_operand.vmem [shape: f32[2,32,256], index: 0, kind: input, shape index: {}]   ;;  %s795_s1 = inlined_call_operand.vmem [shape: f32[32,32], index: 1, kind: input, shape index: {}]   ;;  %s796_s2 = inlined_call_operand.vmem [shape: f32[32,1], index: 2, kind: input, shape index: {}]   ;;  %s797_s3 = inlined_call_operand.vmem [shape: f32[32,1], index: 3, kind: input, shape index: {}]   ;;  %s798_s4 = inlined_call_operand.<no memory space> [shape: f32[1,1], index: 4, kind: input, shape index: {}]   ;;  %s799_s5 = inlined_call_operand.vmem [shape: f32[2,1,256], index: 5, kind: output, shape index: {}]  }
   0x1   :  { %10 = sst [smem:[#allocation2]] %s798_s4  ;;  %s721_s22 = smov 0  }
   0x2 LB: > { %s28_s4 = sadd.s32 1, %s675_s21  ;;  %p583_p0 = scmp.ge.s32.totalorder %s679_s22, 1  ;;  %s679_s22 = sphi %s721_s22, %s16_s22   ;;  %s675_s21 = sphi %s719_s21, %s801_s21   ;;  %s671_s20 = sphi %s717_s20, %s800_s20  }
   0x3   : > { %p30_p1 = scmp.ge.s32.totalorder %s28_s4, 2  ;;  %p209_p2 = scmp.lt.s32.totalorder %s679_s22, 3 }
   0x5   : > { %s803_s4 = smov (%p30_p1, %s28_s4), 0  ;;  %p210_p3 = pnand %p583_p0, %p209_p2 }
   0x6   : > { %p245_p4 = scmp.lt.s32.totalorder (!%p210_p3), %s671_s20, 1  ;;  %s459_s29 = sld [smem:[#allocation2]] (!%p210_p3) }
   0x7   : > { %213 = sbr.rel (%p210_p3) target bundleno = 300 (0x12c), region = 40 }
   0xc   : > { %v681_v0 = vmov 0.0   ;;  %v275_v1 = vld [vmem:[%s796_s2] sm:$0xff]  ;;  %v277_v2 = vld [vmem:[%s796_s2 + $0x10] sm:$0xff]  ;;  %s805_s20 = smov (!%p245_p4, %s671_s20), 1  ;;  %v682_v3 = vmov 0   ;;  %vm299_vm0 = vcmask 261120  }
   0xd   : > { %376 = vmatprep.mubr.f32.mxu0 %v681_v0  ;;  %388 = vmatprep.mubr.f32.mxu1 %v681_v0  ;;  %s595_s27 = sshll.u32 %s805_s20, 6  ;;  %v271_v12 = vld [vmem:[%s795_s1] sm:$0xff]  ;;  %v273_v13 = vld [vmem:[%s795_s1 + $0x10] sm:$0xff]  ;;  %v276_v14 = vld [vmem:[%s796_s2 + $0x8] sm:$0xff] }
   0xe   : > { %631 = vset.pattern.permute.xlu0 %v682_v3  ;;  %632 = vset.pattern.permute.xlu1 %v682_v3  ;;  %s252_s30 = scalar_lea.vmem %s794_s0, %s595_s27  ;;  %v278_v15 = vld [vmem:[%s796_s2 + $0x18] sm:$0xff]  ;;  %v272_v16 = vld [vmem:[%s795_s1 + $0x8] sm:$0xff]  ;;  %v409_v18 = vld [vmem:[%s797_s3] sm:$0xff] }
   0xf   : > { %281 = vperm.xlu0 %631, %v275_v1   ;;  %291 = vperm.xlu1 %632, %v277_v2   ;;  %v270_v4 = vld [vmem:[%s252_s30 + $0x38] sm:$0xff]  ;;  %v269_v5 = vld [vmem:[%s252_s30 + $0x30] sm:$0xff]  ;;  %v268_v6 = vld [vmem:[%s252_s30 + $0x28] sm:$0xff] }
  0x10   : > { %336 = vmatprep.subr.mxu0 %v270_v4  ;;  %596 = vmatprep.subr.mxu1 %v270_v4  ;;  %v267_v7 = vld [vmem:[%s252_s30 + $0x20] sm:$0xff]  ;;  %v266_v8 = vld [vmem:[%s252_s30 + $0x18] sm:$0xff]  ;;  %v265_v9 = vld [vmem:[%s252_s30 + $0x10] sm:$0xff] }
  0x11   : > { %337 = vmatpush1.msra.mxu0 %v269_v5  ;;  %600 = vmatpush1.msra.mxu1 %v269_v5  ;;  %v264_v10 = vld [vmem:[%s252_s30 + $0x8] sm:$0xff]  ;;  %v263_v11 = vld [vmem:[%s252_s30] sm:$0xff]  ;;  %v274_v17 = vld [vmem:[%s795_s1 + $0x18] sm:$0xff]  ;;  %s586_s30 = sshll.u32 %s805_s20, 1 }
  0x12   : > { %338 = vmatprep.subr.mxu0 %v268_v6  ;;  %597 = vmatprep.subr.mxu1 %v268_v6  ;;  %v410_v19 = vld [vmem:[%s797_s3 + $0x8] sm:$0xff]  ;;  %v411_v20 = vld [vmem:[%s797_s3 + $0x10] sm:$0xff]  ;;  %v412_v21 = vld [vmem:[%s797_s3 + $0x18] sm:$0xff]  ;;  %s261_s8 = scalar_lea.vmem %s799_s5, %s586_s30 }
  0x13   : > { %339 = vmatpush1.msra.mxu0 %v267_v7  ;;  %601 = vmatpush1.msra.mxu1 %v267_v7 }
  0x14   : > { %340 = vmatprep.subr.mxu0 %v266_v8  ;;  %598 = vmatprep.subr.mxu1 %v266_v8 }
  0x15   : > { %341 = vmatpush1.msra.mxu0 %v265_v9  ;;  %602 = vmatpush1.msra.mxu1 %v265_v9 }
  0x16   : > { %342 = vmatprep.subr.mxu0 %v264_v10  ;;  %599 = vmatprep.subr.mxu1 %v264_v10 }
  0x17   : > { %343 = vmatpush1.msra.mxu0 %v263_v11  ;;  %603 = vmatpush1.msra.mxu1 %v263_v11 }
  0x18   : > { %587 = vmatmul.mubr.msk.f32.vlgmr.msra.gmra.mxu0 %vm299_vm0, %v271_v12  ;;  %589 = vmatmul.mubr.msk.f32.vlgmr.msra.gmra.mxu1 %vm299_vm0, %v273_v13  ;;  %v460_v13 = vstv %s459_s29 }
  0x19   : > { %382 = vmatprep.mubr.f32.mxu0 %v681_v0  ;;  %394 = vmatprep.mubr.f32.mxu1 %v681_v0 }
  0x1a   : > { %286 = vperm.xlu0 %631, %v276_v14   ;;  %296 = vperm.xlu1 %632, %v278_v15  }
  0x1c   : > { %588 = vmatmul.mubr.msk.f32.gmra.mxu0 %vm299_vm0, %v272_v16  ;;  %590 = vmatmul.mubr.msk.f32.gmra.mxu1 %vm299_vm0, %v274_v17 }
  0x1e   : > { %415 = vperm.xlu0 %631, %v409_v18   ;;  %420 = vperm.xlu1 %632, %v410_v19  }
  0x22   : > { %425 = vperm.xlu0 %631, %v411_v20   ;;  %430 = vperm.xlu1 %632, %v412_v21  }
  0x8a   : > { %v282_v22 = vpop.permute.xlu0 %281  ;;  %v292_v23 = vpop.permute.xlu1 %291 }
  0x95   : > { %v287_v30 = vpop.permute.xlu0 %286  ;;  %v297_v31 = vpop.permute.xlu1 %296 }
  0x99   : > { %v416_v43 = vpop.permute.xlu0 %415  ;;  %v421_v46 = vpop.permute.xlu1 %420 }
  0x9d   : > { %v426_v53 = vpop.permute.xlu0 %425  ;;  %v431_v59 = vpop.permute.xlu1 %430 }
  0xd8   : > { %v378_v24 = vpop.f32.mrf.mxu0  ;;  %v390_v25 = vpop.f32.mrf.mxu1 }
  0xd9   : > { %v379_v26 = vadd.f32 %v378_v24, %v282_v22  ;;  %v391_v27 = vadd.f32 %v390_v25, %v292_v23  ;;  %v683_v25 = vmov 1966171168  }
  0xda   : > { %v380_v28 = vpop.f32.mrf.mxu0  ;;  %v392_v29 = vpop.f32.mrf.mxu1 }
  0xdb   : > { %633 = vtanh.f32 %v379_v26  ;;  %v381_v32 = vadd.f32 %v380_v28, %v282_v22  ;;  %v393_v33 = vadd.f32 %v392_v29, %v292_v23  ;;  %v479_v26 = vunpack.c.l.s4 %v683_v25 }
  0xdc   : > { %635 = vtanh.f32 %v391_v27  ;;  %v384_v34 = vpop.f32.mrf.mxu0  ;;  %v396_v35 = vpop.f32.mrf.mxu1  ;;  %v481_v27 = vlaneseq }
  0xdd   : > { %637 = vtanh.f32 %v381_v32  ;;  %v385_v36 = vadd.f32 %v384_v34, %v287_v30  ;;  %v397_v37 = vadd.f32 %v396_v35, %v297_v31  ;;  %v480_v28 = vunpack.c.0.s8 %v479_v26 }
  0xde   : > { %639 = vtanh.f32 %v393_v33  ;;  %v386_v38 = vpop.f32.mrf.mxu0  ;;  %v398_v39 = vpop.f32.mrf.mxu1  ;;  %v482_v29 = vshrl.u32 %v481_v27, 7  ;;  %vm495_vm1 = vcmp.lt.s32.totalorder %v481_v27, 256 }
  0xdf   : > { %641 = vtanh.f32 %v385_v36  ;;  %v387_v40 = vadd.f32 %v386_v38, %v287_v30  ;;  %v399_v41 = vadd.f32 %v398_v39, %v297_v31 }
  0xe0   : > { %643 = vtanh.f32 %v397_v37  ;;  %v483_v31 = vsub.s32 %v480_v28, %v482_v29 }
  0xe1   : > { %645 = vtanh.f32 %v387_v40 }
  0xe2   : > { %647 = vtanh.f32 %v399_v41 }
  0xe8   : > { %v634_v42 = vpop.eup %633 }
  0xe9   : > { %v636_v44 = vpop.eup %635  ;;  %v433_v50 = vmul.f32 %v634_v42, %v416_v43 }
  0xea   : > { %v638_v45 = vpop.eup %637  ;;  %v437_v54 = vmul.f32 %v636_v44, %v426_v53 }
  0xeb   : > { %v640_v47 = vpop.eup %639  ;;  %v434_v55 = vmul.f32 %v638_v45, %v416_v43 }
  0xec   : > { %v642_v48 = vpop.eup %641  ;;  %v438_v60 = vmul.f32 %v640_v47, %v426_v53 }
  0xed   : > { %v644_v49 = vpop.eup %643  ;;  %v435_v51 = vmul.f32 %v642_v48, %v421_v46 }
  0xee   : > { %v646_v52 = vpop.eup %645  ;;  %v439_v61 = vmul.f32 %v644_v49, %v431_v59 }
  0xef   : > { %v441_v56 = vadd.f32 %v435_v51, %v433_v50  ;;  %v436_v57 = vmul.f32 %v646_v52, %v421_v46  ;;  %v648_v58 = vpop.eup %647 }
  0xf0   : > { %v440_v1 = vmul.f32 %v648_v58, %v431_v59 }
  0xf1   : > { %v442_v62 = vadd.f32 %v441_v56, %v437_v54  ;;  %v450_v63 = vadd.f32 %v436_v57, %v434_v55 }
  0xf3   : > { %v443_v0 = vadd.f32 %v442_v62, %v439_v61  ;;  %v451_v2 = vadd.f32 %v450_v63, %v438_v60 }
  0xf5   : > { %v444_v3 = vrot.slane %v443_v0, 4  ;;  %v452_v4 = vadd.f32 %v451_v2, %v440_v1 }
  0xf7   : > { %v445_v5 = vadd.f32 %v444_v3, %v443_v0  ;;  %v453_v6 = vrot.slane %v452_v4, 4 }
  0xf9   : > { %v446_v7 = vrot.slane %v445_v5, 2  ;;  %v454_v8 = vadd.f32 %v453_v6, %v452_v4 }
  0xfb   : > { %v447_v9 = vadd.f32 %v446_v7, %v445_v5  ;;  %v455_v10 = vrot.slane %v454_v8, 2 }
  0xfd   : > { %v448_v11 = vrot.slane %v447_v9, 1  ;;  %v456_v12 = vadd.f32 %v455_v10, %v454_v8 }
  0xff   : > { %v449_v14 = vadd.f32 %v448_v11, %v447_v9  ;;  %v457_v15 = vrot.slane %v456_v12, 1 }
 0x101   : > { %v461_v16 = vadd.f32 %v460_v13, %v449_v14  ;;  %v458_v17 = vadd.f32 %v457_v15, %v456_v12 }
 0x103   : > { %v591_v18 = vmul.f32 -1.442695, %v461_v16  ;;  %v462_v19 = vadd.f32 %v460_v13, %v458_v17 }
 0x105   : > { %649 = vpow2.f32 %v591_v18  ;;  %v592_v20 = vmul.f32 -1.442695, %v462_v19 }
 0x107   : > { %651 = vpow2.f32 %v592_v20 }
 0x112   : > { %v650_v21 = vpop.eup %649 }
 0x113   : > { %v469_v22 = vadd.f32 1.0, %v650_v21 }
 0x114   : > { %v652_v23 = vpop.eup %651 }
 0x115   : > { %v470_v24 = vadd.f32 1.0, %v652_v23  ;;  %653 = vrcp.f32 %v469_v22 }
 0x117   : > { %655 = vrcp.f32 %v470_v24 }
 0x122   : > { %v654_v30 = vpop.eup %653 }
 0x124   : > { %v656_v32 = vpop.eup %655 }
 0x125   : > { %v477_v33 = vcombine.low %v654_v30, %v656_v32 }
 0x127   : > { %v484_v34 = vrot.slane %v477_v33, %v483_v31 }
 0x129   : > { %v491_v35 = vrot.slane %v484_v34, %v483_v31 }
 0x12b   : > { %497 = vst.msk [vmem:[%s261_s8] sm:$0x3] %vm495_vm1, %v491_v35 }
 0x12c PF: > { %s16_s22 = sadd.s32 1, %s679_s22   ;;  %s800_s20 = smov %s675_s21 }
 0x12d   : > { %p13_p5 = scmp.ge.s32.totalorder %s16_s22, 4   ;;  %s801_s21 = smov %s803_s4 }
 0x12f   :  { %15 = sbr.rel (!%p13_p5) target bundleno = 2 (0x2), region = 70 }

</bundles_post_ra>
